<compile_context>
chip_gen: v5e
topology: v5e:2x2
jax: 0.10.0
libtpu: 0.0.40
codegen_flags: <defaults>
</compile_context>

<pallas_src>
import numpy as np
import jax
import jax.numpy as jnp
from jax.experimental import pallas as pl
from jax.experimental.pallas import tpu as pltpu


def _round_up(x, m):
    return (x + m - 1) // m * m


# ------------------------------- kernels ------------------------------------

def relu_linear_kernel_inplace(x_ref, w_ref, b_ref, o_ref):
    """f32-output path: accumulate straight into the VMEM-resident output.

    x_ref: (tm, tk)  activation tile
    w_ref: (tk, tn)  weight tile, pre-transposed to (K, N) in the wrapper
    b_ref: (1, tn)   bias tile (f32)
    o_ref: (tm, tn)  f32 output tile; its block index (i, j) is constant across
                     the k grid axis, so it is resident and doubles as the
                     accumulator (no scratch, no final copy).
    """
    k = pl.program_id(2)

    @pl.when(k == 0)
    def _():
        o_ref[...] = jnp.zeros_like(o_ref)

    o_ref[...] += jnp.dot(x_ref[...], w_ref[...],
                          preferred_element_type=jnp.float32)

    @pl.when(k == pl.num_programs(2) - 1)
    def _():
        o_ref[...] = jnp.maximum(o_ref[...] + b_ref[...], 0.0)


def relu_linear_kernel_scratch(x_ref, w_ref, b_ref, o_ref, acc_ref):
    """Narrow-output path: f32 VMEM scratch accumulator, cast on writeback."""
    k = pl.program_id(2)

    @pl.when(k == 0)
    def _():
        acc_ref[...] = jnp.zeros_like(acc_ref)

    acc_ref[...] += jnp.dot(x_ref[...], w_ref[...],
                            preferred_element_type=jnp.float32)

    @pl.when(k == pl.num_programs(2) - 1)
    def _():
        o_ref[...] = jnp.maximum(acc_ref[...] + b_ref[...],
                                 0.0).astype(o_ref.dtype)


# ---------------------------- sizing helpers ---------------------------------

def _vmem_budget_bytes():
    """Scoped VMEM budget derived from the actual chip (v7x has half of v6e)."""
    try:
        cap = int(pltpu.get_tpu_info().vmem_capacity_bytes)
    except Exception:
        cap = 64 << 20  # conservative: assume a v7x-class 64 MiB TensorCore
    # Leave ~25% headroom for compiler internals; 96 MiB cap is ample on
    # 128 MiB chips (v5e/v6e), 48 MiB on v7x.
    return int(min(max(cap * 3 // 4, 16 << 20), 96 << 20))


def _vmem_need_bytes(tm, tn, tk, in_itemsize, out_itemsize, use_scratch,
                     w_buffers):
    need = 2 * tm * tk * in_itemsize            # x double-buffer
    need += w_buffers * tk * tn * in_itemsize   # weight buffers
    need += 2 * 1 * tn * 4                      # bias (f32) double-buffer
    need += 2 * tm * tn * out_itemsize          # output buffers
    if use_scratch:
        need += tm * tn * 4                     # f32 accumulator
    return need


def _choose_tile(dim, granule, target):
    """Pad `dim` to `granule`, then pick the largest granule-multiple tile that
    divides the padded dim and is <= `target`.  Only over-pads beyond the
    granule when the best divisor would be pathologically small."""
    target = max(granule, target // granule * granule)
    dim_pad = _round_up(dim, granule)
    if dim_pad <= target:
        return dim_pad, dim_pad
    tile = granule
    for cand in range(target, granule - 1, -granule):
        if dim_pad % cand == 0:
            tile = cand
            break
    if tile * 4 < target:
        # No decent divisor (e.g. prime-ish dim): accept a larger pad to keep
        # the grid-step count low.
        tile = target
        dim_pad = _round_up(dim, tile)
    return dim_pad, tile


# -------------------------------- wrapper ------------------------------------

def relu_layer(x, weight, bias=None, *, tm=None, tn=None, tk=None,
               mxu_dtype=None, weight_buffers=None):
    """y = ReLU(x @ weight.T + bias).

    x:      (M, K)
    weight: (N, K)  -- PyTorch nn.Linear layout; transposed once (wrapper-side)
                       to (K, N) so the kernel contracts the RHS major dim.
    bias:   (N,) or None
    mxu_dtype: optional matmul-operand dtype (e.g. jnp.bfloat16 for the MXU
               fast path); accumulation, bias add and ReLU stay f32.
    weight_buffers: optional pipeline depth for the weight stream
                    (pl.Buffered); only useful if the weight DMA is exposed.
    """
    M, K = x.shape
    N, K2 = weight.shape
    assert K == K2, (K, K2)
    out_dtype = x.dtype
    if bias is None:
        bias = jnp.zeros((N,), jnp.float32)

    op_dtype = np.dtype(mxu_dtype) if mxu_dtype is not None else np.dtype(x.dtype)
    in_itemsize = op_dtype.itemsize
    out_itemsize = np.dtype(out_dtype).itemsize
    use_scratch = np.dtype(out_dtype) != np.dtype(np.float32)

    # Sublane granule of the matmul-operand dtype: 8 f32 / 16 bf16 / 32 int8.
    m_granule = max(8, 32 // in_itemsize)

    # Tile targets (sweepable); K/N stay lane-dense multiples of 128.
    tgt_m = tm if tm is not None else 512
    tgt_n = tn if tn is not None else 512
    tgt_k = tk if tk is not None else 2048
    w_bufs = 2 if weight_buffers is None else int(weight_buffers)

    budget = _vmem_budget_bytes()

    def _half(v, floor, granule):
        return max(floor, v // 2 // granule * granule)

    # Shrink targets (tk first, then tn, then tm) until they fit the budget.
    while _vmem_need_bytes(min(tgt_m, _round_up(M, m_granule)),
                           min(tgt_n, _round_up(N, 128)),
                           min(tgt_k, _round_up(K, 128)),
                           in_itemsize, out_itemsize, use_scratch,
                           w_bufs) > budget:
        if tgt_k > 256:
            tgt_k = _half(tgt_k, 128, 128)
        elif tgt_n > 256:
            tgt_n = _half(tgt_n, 128, 128)
        elif tgt_m > m_granule:
            tgt_m = _half(tgt_m, m_granule, m_granule)
        else:
            break

    M_pad, tm = _choose_tile(M, m_granule, tgt_m)
    K_pad, tk = _choose_tile(K, 128, tgt_k)
    N_pad, tn = _choose_tile(N, 128, tgt_n)

    # ---- cast + minimal zero-pad (granule-only; fused by XLA into one pass).
    x_op = x.astype(op_dtype) if op_dtype != x.dtype else x
    w_op = weight.astype(op_dtype) if op_dtype != weight.dtype else weight
    if (M_pad, K_pad) != (M, K):
        x_op = jnp.pad(x_op, ((0, M_pad - M), (0, K_pad - K)))
    # One-time weight transpose to (K, N): the kernel's dot then contracts the
    # RHS on its major dim, so no per-K-step XLU transpose is emitted.
    w_kn = w_op.T
    if (K_pad, N_pad) != (K, N):
        w_kn = jnp.pad(w_kn, ((0, K_pad - K), (0, N_pad - N)))
    b2d = bias.astype(jnp.float32).reshape(1, N)
    if N_pad != N:
        b2d = jnp.pad(b2d, ((0, 0), (0, N_pad - N)))

    grid = (M_pad // tm, N_pad // tn, K_pad // tk)

    w_spec_kwargs = {}
    if weight_buffers is not None:
        w_spec_kwargs = dict(pipeline_mode=pl.Buffered(w_bufs))
    in_specs = [
        pl.BlockSpec((tm, tk), lambda i, j, k: (i, k)),                  # x
        pl.BlockSpec((tk, tn), lambda i, j, k: (k, j), **w_spec_kwargs), # W^T
        pl.BlockSpec((1, tn), lambda i, j, k: (0, j)),                   # bias
    ]
    out_spec = pl.BlockSpec((tm, tn), lambda i, j, k: (i, j))

    if use_scratch:
        kernel = relu_linear_kernel_scratch
        scratch = [pltpu.VMEM((tm, tn), jnp.float32)]
    else:
        kernel = relu_linear_kernel_inplace
        scratch = []

    vmem_need = _vmem_need_bytes(tm, tn, tk, in_itemsize, out_itemsize,
                                 use_scratch, w_bufs)
    vmem_limit = int(min(max(2 * vmem_need, 8 << 20), budget))

    out = pl.pallas_call(
        kernel,
        out_shape=jax.ShapeDtypeStruct((M_pad, N_pad), out_dtype),
        grid_spec=pltpu.PrefetchScalarGridSpec(
            num_scalar_prefetch=0,
            grid=grid,
            in_specs=in_specs,
            out_specs=out_spec,
            scratch_shapes=scratch,
        ),
        compiler_params=pltpu.CompilerParams(
            dimension_semantics=("parallel", "parallel", "arbitrary"),
            vmem_limit_bytes=vmem_limit,
        ),
        cost_estimate=pl.CostEstimate(
            flops=2 * M * N * K,
            transcendentals=0,
            bytes_accessed=(M * K + K * N) * in_itemsize
                           + M * N * out_itemsize + N * 4,
        ),
    )(x_op, w_kn, b2d)

    return out[:M, :N]


# ------------------------------ init (spec) ----------------------------------

def init_relu_layer_params(key, in_features, out_features, is_first=False):
    """Matches ReLULayer.init_weights; bias keeps PyTorch's default nn.Linear
    init U(-1/sqrt(in), 1/sqrt(in))."""
    kw, kb = jax.random.split(key)
    if is_first:
        bound_w = 1.0 / in_features
    else:
        bound_w = float(np.sqrt(6.0 / in_features))
    weight = jax.random.uniform(
        kw, (out_features, in_features), jnp.float32, -bound_w, bound_w)
    bound_b = 1.0 / float(np.sqrt(in_features))
    bias = jax.random.uniform(kb, (out_features,), jnp.float32, -bound_b, bound_b)
    return weight, bias


# --------------------------------- main --------------------------------------

if __name__ == "__main__":
    key = jax.random.PRNGKey(0)
    k_x, k_p, k_x2, k_p2, k_x3, k_p3 = jax.random.split(key, 6)

    # 1) Small SIREN-style layer (f32 in-place accumulation path).
    batch, in_features, out_features = 64, 32, 32
    x = jax.random.normal(k_x, (batch, in_features), jnp.float32)
    weight, bias = init_relu_layer_params(k_p, in_features, out_features)
    out = jax.block_until_ready(relu_layer(x, weight, bias))
    ref = jnp.maximum(x @ weight.T + bias, 0.0)
    np.testing.assert_allclose(np.asarray(out), np.asarray(ref),
                               rtol=1e-5, atol=1e-5)

    # 2) Ragged shapes exercise the granule-only padding path.
    x2 = jax.random.normal(k_x2, (100, 48), jnp.float32)
    w2, b2 = init_relu_layer_params(k_p2, 48, 96, is_first=True)
    out2 = jax.block_until_ready(relu_layer(x2, w2, b2))
    ref2 = jnp.maximum(x2 @ w2.T + b2, 0.0)
    np.testing.assert_allclose(np.asarray(out2), np.asarray(ref2),
                               rtol=1e-5, atol=1e-5)

    # 3) Multi-block grid with a real K reduction (tile overrides).
    x3 = jax.random.normal(k_x3, (64, 256), jnp.float32)
    w3, b3 = init_relu_layer_params(k_p3, 256, 256)
    out3 = jax.block_until_ready(relu_layer(x3, w3, b3, tn=128, tk=128))
    ref3 = jnp.maximum(x3 @ w3.T + b3, 0.0)
    np.testing.assert_allclose(np.asarray(out3), np.asarray(ref3),
                               rtol=1e-4, atol=1e-4)

    # 4) bf16 MXU operands with f32 output (fast path; looser tolerance).
    out_bf = jax.block_until_ready(
        relu_layer(x, weight, bias, mxu_dtype=jnp.bfloat16))
    np.testing.assert_allclose(np.asarray(out_bf), np.asarray(ref),
                               rtol=2e-2, atol=2e-2)

    # 5) bf16 activations end-to-end (narrow-output scratch-accumulator path).
    x_b = x.astype(jnp.bfloat16)
    out_b = jax.block_until_ready(relu_layer(x_b, weight, bias))
    np.testing.assert_allclose(np.asarray(out_b, dtype=np.float32),
                               np.asarray(ref), rtol=3e-2, atol=3e-2)

    print("KERNEL_OK")
</pallas_src>

<mosaic_0001>
module attributes {stable_mosaic.version = 11 : i64} {
  func.func @relu_linear_kernel_inplace(%arg0: i32, %arg1: i32, %arg2: i32, %arg3: memref<64x128xf32, #tpu.memory_space<vmem>>, %arg4: memref<128x128xf32, #tpu.memory_space<vmem>>, %arg5: memref<1x128xf32, #tpu.memory_space<vmem>>, %arg6: memref<64x128xf32, #tpu.memory_space<vmem>>) attributes {dimension_semantics = [#tpu.dimension_semantics<parallel>, #tpu.dimension_semantics<parallel>, #tpu.dimension_semantics<arbitrary>], iteration_bounds = array<i64: 1, 1, 1>, scalar_prefetch = 0 : i64, scratch_operands = 0 : i64, tpu.core_type = #tpu.core_type<tc>, window_params = [{transform_indices = @transform_0, window_bounds = array<i64: 64, 128>}, {transform_indices = @transform_1, window_bounds = array<i64: 128, 128>}, {transform_indices = @transform_2, window_bounds = array<i64: 1, 128>}, {transform_indices = @transform_3, window_bounds = array<i64: 64, 128>}]} {
    %c0_i32 = arith.constant 0 : i32
    %0 = arith.cmpi eq, %arg2, %c0_i32 : i32
    %1 = arith.extui %0 : i1 to i32
    %c0_i32_0 = arith.constant 0 : i32
    %2 = arith.cmpi ne, %1, %c0_i32_0 : i32
    scf.if %2 {
      %cst_10 = arith.constant 0.000000e+00 : f32
      %12 = vector.broadcast %cst_10 : f32 to vector<64x128xf32>
      %c0_11 = arith.constant 0 : index
      %c0_12 = arith.constant 0 : index
      %13 = vector.load %arg6[%c0_11, %c0_12] : memref<64x128xf32, #tpu.memory_space<vmem>>, vector<64x128xf32>
      tpu.vector_store %arg6[%c0_11, %c0_12], %12 {strides = array<i32>} : memref<64x128xf32, #tpu.memory_space<vmem>>, vector<64x128xf32>,
    } else {
    }
    %c0 = arith.constant 0 : index
    %c0_1 = arith.constant 0 : index
    %3 = vector.load %arg6[%c0, %c0_1] : memref<64x128xf32, #tpu.memory_space<vmem>>, vector<64x128xf32>
    %c0_2 = arith.constant 0 : index
    %c0_3 = arith.constant 0 : index
    %4 = vector.load %arg3[%c0_2, %c0_3] : memref<64x128xf32, #tpu.memory_space<vmem>>, vector<64x128xf32>
    %c0_4 = arith.constant 0 : index
    %c0_5 = arith.constant 0 : index
    %5 = vector.load %arg4[%c0_4, %c0_5] : memref<128x128xf32, #tpu.memory_space<vmem>>, vector<128x128xf32>
    %cst = arith.constant dense<0.000000e+00> : vector<64x128xf32>
    %6 = tpu.matmul %4, %5, %cst {dimension_numbers = #tpu.dot_dimension_numbers<[1], [0], [0], [1], [0, 0, 1, 1], [], []>} : vector<64x128xf32>, vector<128x128xf32>, vector<64x128xf32> -> vector<64x128xf32>
    %7 = arith.addf %3, %6 : vector<64x128xf32>
    %c0_6 = arith.constant 0 : index
    %c0_7 = arith.constant 0 : index
    %8 = vector.load %arg6[%c0_6, %c0_7] : memref<64x128xf32, #tpu.memory_space<vmem>>, vector<64x128xf32>
    tpu.vector_store %arg6[%c0_6, %c0_7], %7 {strides = array<i32>} : memref<64x128xf32, #tpu.memory_space<vmem>>, vector<64x128xf32>,
    %c0_i32_8 = arith.constant 0 : i32
    %9 = arith.cmpi eq, %arg2, %c0_i32_8 : i32
    %10 = arith.extui %9 : i1 to i32
    %c0_i32_9 = arith.constant 0 : i32
    %11 = arith.cmpi ne, %10, %c0_i32_9 : i32
    scf.if %11 {
      %c0_10 = arith.constant 0 : index
      %c0_11 = arith.constant 0 : index
      %12 = vector.load %arg6[%c0_10, %c0_11] : memref<64x128xf32, #tpu.memory_space<vmem>>, vector<64x128xf32>
      %c0_12 = arith.constant 0 : index
      %c0_13 = arith.constant 0 : index
      %13 = vector.load %arg5[%c0_12, %c0_13] : memref<1x128xf32, #tpu.memory_space<vmem>>, vector<1x128xf32>
      %14 = vector.broadcast %13 : vector<1x128xf32> to vector<64x128xf32>
      %15 = arith.addf %12, %14 : vector<64x128xf32>
      %cst_14 = arith.constant 0.000000e+00 : f32
      %16 = vector.broadcast %cst_14 : f32 to vector<64x128xf32>
      %17 = arith.maximumf %15, %16 : vector<64x128xf32>
      %c0_15 = arith.constant 0 : index
      %c0_16 = arith.constant 0 : index
      %18 = vector.load %arg6[%c0_15, %c0_16] : memref<64x128xf32, #tpu.memory_space<vmem>>, vector<64x128xf32>
      tpu.vector_store %arg6[%c0_15, %c0_16], %17 {strides = array<i32>} : memref<64x128xf32, #tpu.memory_space<vmem>>, vector<64x128xf32>,
    } else {
    }
    return
  }
  func.func @transform_0(%arg0: i32, %arg1: i32, %arg2: i32) -> (i32, i32) {
    %c0_i32 = arith.constant 0 : i32
    return %arg0, %arg2 : i32, i32
  }
  func.func @transform_1(%arg0: i32, %arg1: i32, %arg2: i32) -> (i32, i32) {
    %c0_i32 = arith.constant 0 : i32
    return %arg2, %arg1 : i32, i32
  }
  func.func @transform_2(%arg0: i32, %arg1: i32, %arg2: i32) -> (i32, i32) {
    %c0_i32 = arith.constant 0 : i32
    %c0_i32_0 = arith.constant 0 : i32
    return %c0_i32, %arg1 : i32, i32
  }
  func.func @transform_3(%arg0: i32, %arg1: i32, %arg2: i32) -> (i32, i32) {
    %c0_i32 = arith.constant 0 : i32
    return %arg0, %arg1 : i32, i32
  }
}

</mosaic_0001>

<bundles_post_ra>
// kernel: tpu_custom_call.1
= control target key start
LH: loop header
LB: loop body
LE: loop exit
PB: predicated region body
PF: predicated region fallthrough
CT: control target
= control target key end

     0   :  { %8 = vsyncpa [#allocation3], 0  ;;  %s386_s0 = inlined_call_operand.hbm [shape: f32[64,128], index: 0, kind: input, shape index: {}]   ;;  %s387_s1 = inlined_call_operand.hbm [shape: f32[128,128], index: 1, kind: input, shape index: {}]   ;;  %s388_s2 = inlined_call_operand.vmem [shape: f32[1,128], index: 2, kind: input, shape index: {}]   ;;  %s389_s3 = inlined_call_operand.hbm [shape: f32[64,128], index: 3, kind: output, shape index: {}]  }
   0x1   :  { %9 = vsyncpa [#allocation6], 0 }
   0x2   :  { %10 = vsyncpa [#allocation4], 0  ;;  %s15_s14 = sshll.u32 %s386_s0, 4  ;;  %s340_s15 = smov [#allocation2]   ;;  %s16_s14 = int_to_ptr.hbm [resolvable:$true] %s15_s14 }
   0x3   :  { %s17_s16 = sshll.u32 %s340_s15, 4  ;;  %s28_s19 = sshll.u32 %s387_s1, 4  ;;  %s18_s16 = int_to_ptr.vmem [resolvable:$true] %s17_s16  ;;  %s29_s19 = int_to_ptr.hbm [resolvable:$true] %s28_s19 }
   0x4   :  { %s341_s20 = smov 128   ;;  %s342_s21 = smov 8  }
   0x5   :  { %23 = dma.hbm_to_vmem [thread:$0]  %s16_s14, 1024, %s18_s16, [#allocation3], %s341_s20, %s341_s20, %s342_s21  }
   0x6   :  { %s343_s22 = smov [#allocation5]  }
   0x7   :  { %s30_s23 = sshll.u32 %s343_s22, 4  ;;  %s31_s23 = int_to_ptr.vmem [resolvable:$true] %s30_s23 }
   0x8   :  { %36 = dma.hbm_to_vmem [thread:$0]  %s29_s19, 2048, %s31_s23, [#allocation6], %s341_s20, %s341_s20, %s342_s21  }
   0x9   :  { %334 = dma.done.wait [#allocation3], 1024  }
   0xa   :  { %335 = vsyncadd [#allocation3], 4294966272 }
   0xb   :  { %336 = dma.done.wait [#allocation6], 2048  }
   0xc   :  { %337 = vsyncadd [#allocation6], 4294965248  ;;  %v90_v0 = vld [vmem:[#allocation5 + $0x78] sm:$0xff]  ;;  %v89_v1 = vld [vmem:[#allocation5 + $0x70] sm:$0xff]  ;;  %s193_s27 = sshll.u32 %s389_s3, 4  ;;  %s194_s27 = int_to_ptr.hbm [resolvable:$true] %s193_s27 }
   0xd   :  { %208 = vmatpush.msra.mxu2 %v90_v0  ;;  %209 = vmatpush.msra.mxu3 %v90_v0  ;;  %v88_v2 = vld [vmem:[#allocation5 + $0x68] sm:$0xff]  ;;  %v87_v3 = vld [vmem:[#allocation5 + $0x60] sm:$0xff]  ;;  %v86_v4 = vld [vmem:[#allocation5 + $0x58] sm:$0xff] }
   0xe   :  { %91 = vmatpush.msra.mxu0 %v90_v0  ;;  %207 = vmatpush.msra.mxu1 %v90_v0  ;;  %v85_v5 = vld [vmem:[#allocation5 + $0x50] sm:$0xff]  ;;  %v84_v6 = vld [vmem:[#allocation5 + $0x48] sm:$0xff]  ;;  %v83_v7 = vld [vmem:[#allocation5 + $0x40] sm:$0xff] }
   0xf   :  { %211 = vmatpush.msra.mxu2 %v89_v1  ;;  %212 = vmatpush.msra.mxu3 %v89_v1  ;;  %v82_v8 = vld [vmem:[#allocation5 + $0x38] sm:$0xff]  ;;  %v81_v9 = vld [vmem:[#allocation5 + $0x30] sm:$0xff]  ;;  %v80_v10 = vld [vmem:[#allocation5 + $0x28] sm:$0xff] }
  0x10   :  { %92 = vmatpush.msra.mxu0 %v89_v1  ;;  %210 = vmatpush.msra.mxu1 %v89_v1  ;;  %v79_v11 = vld [vmem:[#allocation5 + $0x20] sm:$0xff]  ;;  %v78_v12 = vld [vmem:[#allocation5 + $0x18] sm:$0xff]  ;;  %v77_v13 = vld [vmem:[#allocation5 + $0x10] sm:$0xff] }
  0x11   :  { %214 = vmatpush.msra.mxu2 %v88_v2  ;;  %215 = vmatpush.msra.mxu3 %v88_v2  ;;  %v76_v14 = vld [vmem:[#allocation5 + $0x8] sm:$0xff]  ;;  %v75_v15 = vld [vmem:[#allocation5] sm:$0xff]  ;;  %v73_v17 = vld [vmem:[#allocation2 + $0x30] sm:$0xff] }
  0x12   :  { %93 = vmatpush.msra.mxu0 %v88_v2  ;;  %213 = vmatpush.msra.mxu1 %v88_v2  ;;  %v71_v16 = vld [vmem:[#allocation2 + $0x20] sm:$0xff]  ;;  %v69_v19 = vld [vmem:[#allocation2 + $0x10] sm:$0xff]  ;;  %v72_v20 = vld [vmem:[#allocation2 + $0x28] sm:$0xff] }
  0x13   :  { %217 = vmatpush.msra.mxu2 %v87_v3  ;;  %218 = vmatpush.msra.mxu3 %v87_v3  ;;  %v67_v18 = vld [vmem:[#allocation2] sm:$0xff]  ;;  %v74_v21 = vld [vmem:[#allocation2 + $0x38] sm:$0xff]  ;;  %v68_v22 = vld [vmem:[#allocation2 + $0x8] sm:$0xff] }
  0x14   :  { %94 = vmatpush.msra.mxu0 %v87_v3  ;;  %216 = vmatpush.msra.mxu1 %v87_v3  ;;  %v70_v23 = vld [vmem:[#allocation2 + $0x18] sm:$0xff]  ;;  %v261_v24 = vld [vmem:[%s388_s2] ss:$0 sm:$0xff]  ;;  %s344_s2 = smov [#allocation7]  }
  0x15   :  { %220 = vmatpush.msra.mxu2 %v86_v4  ;;  %221 = vmatpush.msra.mxu3 %v86_v4  ;;  %s191_s24 = sshll.u32 %s344_s2, 4  ;;  %s192_s24 = int_to_ptr.vmem [resolvable:$true] %s191_s24 }
  0x16   :  { %95 = vmatpush.msra.mxu0 %v86_v4  ;;  %219 = vmatpush.msra.mxu1 %v86_v4 }
  0x17   :  { %223 = vmatpush.msra.mxu2 %v85_v5  ;;  %224 = vmatpush.msra.mxu3 %v85_v5 }
  0x18   :  { %96 = vmatpush.msra.mxu0 %v85_v5  ;;  %222 = vmatpush.msra.mxu1 %v85_v5 }
  0x19   :  { %226 = vmatpush.msra.mxu2 %v84_v6  ;;  %227 = vmatpush.msra.mxu3 %v84_v6 }
  0x1a   :  { %97 = vmatpush.msra.mxu0 %v84_v6  ;;  %225 = vmatpush.msra.mxu1 %v84_v6 }
  0x1b   :  { %229 = vmatpush.msra.mxu2 %v83_v7  ;;  %230 = vmatpush.msra.mxu3 %v83_v7 }
  0x1c   :  { %98 = vmatpush.msra.mxu0 %v83_v7  ;;  %228 = vmatpush.msra.mxu1 %v83_v7 }
  0x1d   :  { %232 = vmatpush.msra.mxu2 %v82_v8  ;;  %233 = vmatpush.msra.mxu3 %v82_v8 }
  0x1e   :  { %99 = vmatpush.msra.mxu0 %v82_v8  ;;  %231 = vmatpush.msra.mxu1 %v82_v8 }
  0x1f   :  { %235 = vmatpush.msra.mxu2 %v81_v9  ;;  %236 = vmatpush.msra.mxu3 %v81_v9 }
  0x20   :  { %100 = vmatpush.msra.mxu0 %v81_v9  ;;  %234 = vmatpush.msra.mxu1 %v81_v9 }
  0x21   :  { %238 = vmatpush.msra.mxu2 %v80_v10  ;;  %239 = vmatpush.msra.mxu3 %v80_v10 }
  0x22   :  { %101 = vmatpush.msra.mxu0 %v80_v10  ;;  %237 = vmatpush.msra.mxu1 %v80_v10 }
  0x23   :  { %241 = vmatpush.msra.mxu2 %v79_v11  ;;  %242 = vmatpush.msra.mxu3 %v79_v11 }
  0x24   :  { %102 = vmatpush.msra.mxu0 %v79_v11  ;;  %240 = vmatpush.msra.mxu1 %v79_v11 }
  0x25   :  { %244 = vmatpush.msra.mxu2 %v78_v12  ;;  %245 = vmatpush.msra.mxu3 %v78_v12 }
  0x26   :  { %103 = vmatpush.msra.mxu0 %v78_v12  ;;  %243 = vmatpush.msra.mxu1 %v78_v12 }
  0x27   :  { %247 = vmatpush.msra.mxu2 %v77_v13  ;;  %248 = vmatpush.msra.mxu3 %v77_v13 }
  0x28   :  { %104 = vmatpush.msra.mxu0 %v77_v13  ;;  %246 = vmatpush.msra.mxu1 %v77_v13 }
  0x29   :  { %250 = vmatpush.msra.mxu2 %v76_v14  ;;  %251 = vmatpush.msra.mxu3 %v76_v14 }
  0x2a   :  { %105 = vmatpush.msra.mxu0 %v76_v14  ;;  %249 = vmatpush.msra.mxu1 %v76_v14 }
  0x2b   :  { %253 = vmatpush.msra.mxu2 %v75_v15  ;;  %254 = vmatpush.msra.mxu3 %v75_v15 }
  0x2c   :  { %119 = vmatmul.f32.vlgmr.msra.gmra.mxu2 %v71_v16  ;;  %125 = vmatmul.f32.vlgmr.msra.gmra.mxu3 %v73_v17 }
  0x2d   :  { %106 = vmatpush.msra.mxu0 %v75_v15  ;;  %252 = vmatpush.msra.mxu1 %v75_v15 }
  0x2e   :  { %107 = vmatmul.f32.vlgmr.msra.gmra.mxu0 %v67_v18  ;;  %113 = vmatmul.f32.vlgmr.msra.gmra.mxu1 %v69_v19 }
  0x34   :  { %122 = vmatmul.f32.gmra.mxu2 %v72_v20  ;;  %128 = vmatmul.f32.gmra.mxu3 %v74_v21 }
  0x36   :  { %110 = vmatmul.f32.gmra.mxu0 %v68_v22  ;;  %116 = vmatmul.f32.gmra.mxu1 %v70_v23 }
  0xab   :  { %v108_v25 = vpop.f32.mrf.mxu0  ;;  %v114_v26 = vpop.f32.mrf.mxu1 }
  0xac   :  { %v163_v27 = vadd.f32 %v261_v24, %v108_v25  ;;  %v165_v28 = vadd.f32 %v261_v24, %v114_v26 }
  0xae   :  { %v171_v31 = vmax.f32 %v163_v27, 0.0  ;;  %v173_v32 = vmax.f32 %v165_v28, 0.0 }
  0xaf   :  { %v120_v29 = vpop.f32.mrf.mxu2  ;;  %v126_v30 = vpop.f32.mrf.mxu3 }
  0xb0   :  { %179 = vst [vmem:[#allocation7] sm:$0xff] %v171_v31  ;;  %v167_v33 = vadd.f32 %v261_v24, %v120_v29  ;;  %v169_v34 = vadd.f32 %v261_v24, %v126_v30 }
  0xb1   :  { %181 = vst [vmem:[#allocation7 + $0x10] sm:$0xff] %v173_v32 }
  0xb2   :  { %v175_v37 = vmax.f32 %v167_v33, 0.0  ;;  %v177_v38 = vmax.f32 %v169_v34, 0.0 }
  0xb3   :  { %v111_v35 = vpop.f32.mrf.mxu0  ;;  %v117_v36 = vpop.f32.mrf.mxu1 }
  0xb4   :  { %183 = vst [vmem:[#allocation7 + $0x20] sm:$0xff] %v175_v37  ;;  %v164_v39 = vadd.f32 %v261_v24, %v111_v35  ;;  %v166_v40 = vadd.f32 %v261_v24, %v117_v36 }
  0xb5   :  { %185 = vst [vmem:[#allocation7 + $0x30] sm:$0xff] %v177_v38 }
  0xb6   :  { %v172_v43 = vmax.f32 %v164_v39, 0.0  ;;  %v174_v44 = vmax.f32 %v166_v40, 0.0 }
  0xb7   :  { %v123_v41 = vpop.f32.mrf.mxu2  ;;  %v129_v42 = vpop.f32.mrf.mxu3 }
  0xb8   :  { %180 = vst [vmem:[#allocation7 + $0x8] sm:$0xff] %v172_v43  ;;  %v168_v45 = vadd.f32 %v261_v24, %v123_v41  ;;  %v170_v46 = vadd.f32 %v261_v24, %v129_v42 }
  0xb9   :  { %182 = vst [vmem:[#allocation7 + $0x18] sm:$0xff] %v174_v44 }
  0xba   :  { %v176_v47 = vmax.f32 %v168_v45, 0.0  ;;  %v178_v48 = vmax.f32 %v170_v46, 0.0 }
  0xbc   :  { %184 = vst [vmem:[#allocation7 + $0x28] sm:$0xff] %v176_v47 }
  0xbd   :  { %186 = vst [vmem:[#allocation7 + $0x38] sm:$0xff] %v178_v48 }
  0xbe   :  { %199 = dma.vmem_to_hbm [thread:$0]  %s192_s24, 1024, %s194_s27, [#allocation4], %s341_s20, %s341_s20, %s342_s21  }
  0xbf   :  { %338 = dma.done.wait [#allocation4], 1024  }
  0xc0   :  { %339 = vsyncadd [#allocation4], 4294966272 }
  0xc1   :  { %204 = vsyncpa [#allocation3], 1 }
  0xc2   :  { %205 = vsyncpa [#allocation6], 1 }
  0xc3   :  { %206 = vsyncpa [#allocation4], 1 }

</bundles_post_ra>
